<compile_context>
chip_gen: v7x
topology: tpu7x:2x2x1
jax: 0.10.0
libtpu: 0.0.40
codegen_flags: <defaults>
</compile_context>

<pallas_src>
import functools

import jax
import jax.numpy as jnp
from jax.experimental import pallas as pl
from jax.experimental.pallas import tpu as pltpu

_COORD_DIM = 3
_ANGLE_DIM = 4
_OUT_W = 8  # fused head width (3 coord + 4 angle + 1 zero pad)


def _round_up(x, m):
    return ((x + m - 1) // m) * m


def _cdiv(a, b):
    return (a + b - 1) // b


def _pose_decoder_kernel(x_ref, w_ref, b_ref, coord_ref, angle_ref):
    # One fused matmul: [tile, D] @ [D, 8] -> [tile, 8], f32 accumulate.
    y = jnp.dot(x_ref[...], w_ref[...], preferred_element_type=jnp.float32)
    y = y + b_ref[...]                                    # (1, 8) f32 bias

    coords = y[:, :_COORD_DIM]
    ang = y[:, _COORD_DIM:_COORD_DIM + _ANGLE_DIM]

    # L2-normalize the quaternion columns only.
    # max(sq, 1e-24) == (max(||v||, 1e-12))**2, matching F.normalize(eps=1e-12).
    sq = jnp.sum(ang * ang, axis=-1, keepdims=True)
    inv = jax.lax.rsqrt(jnp.maximum(sq, 1e-24))           # EUP slot

    coord_ref[...] = coords.astype(coord_ref.dtype)
    angle_ref[...] = (ang * inv).astype(angle_ref.dtype)


def _vmem_capacity_bytes():
    try:
        return int(pltpu.get_tpu_info().vmem_capacity_bytes)
    except Exception:
        return 64 * 1024 * 1024  # conservative (v7x per-TC)


@functools.partial(jax.jit, static_argnames=("row_tile",))
def vo_pose_quaternion_decoder(x, w_coord, b_coord, w_angle, b_angle,
                               row_tile=None):
    """x: (..., input_dim).  Returns (coords (..., 3), angles (..., 4))."""
    *lead, d = x.shape
    x2 = x.reshape(-1, d)
    n = x2.shape[0]

    itemsize = jnp.dtype(x.dtype).itemsize
    # Sub-32-bit dtypes pack along sublanes: keep the row tile a multiple of
    # the packed sublane count (8 for f32, 16 for bf16, 32 for int8).
    sub = max(8, 32 // itemsize)

    # ---- generation-aware VMEM budgeting -------------------------------
    vmem_cap = _vmem_capacity_bytes()
    # 128-MiB parts (v5e/v6e): allow up to 96 MiB scoped; 64-MiB v7x: 48 MiB.
    vmem_limit = max(32 * 1024 * 1024, min(vmem_cap - 16 * 1024 * 1024,
                                           96 * 1024 * 1024))

    # Fixed residents: double-buffered fused W (x.dtype) + f32 bias.
    fixed_bytes = 2 * d * _OUT_W * itemsize + 2 * _OUT_W * 4
    # Per-row double-buffered bytes: x block + both outputs, plus slack for
    # the in-kernel f32 intermediates (y, coords, ang, ...).
    row_bytes = 2 * (d + _COORD_DIM + _ANGLE_DIM) * itemsize + 6 * _OUT_W * 4
    headroom = 8 * 1024 * 1024
    budget = max(2 * 1024 * 1024, vmem_limit - fixed_bytes - headroom)
    rows_by_budget = max(sub, budget // row_bytes)

    # Byte-targeted tile: ~4-8 MiB per x buffer, floor of 512 rows when the
    # budget allows (amortizes the ~0.35 us per-grid-step overhead).
    target_x_bytes = (8 if vmem_cap >= 96 * 1024 * 1024 else 4) * 1024 * 1024
    rows_target = max(512, target_x_bytes // max(1, d * itemsize))
    if row_tile is not None:
        rows_target = row_tile
    tile = min(rows_target, rows_by_budget)

    # Don't over-pad tiny inputs; keep >=2 grid steps so the parallel axis
    # can use both TensorCores on v7x.
    n_ceil = _round_up(n, sub)
    tile = min(tile, n_ceil)
    if n_ceil >= 2 * sub:
        tile = min(tile, _round_up(_cdiv(n, 2), sub))
    tile = max(sub, (tile // sub) * sub)

    n_pad = _round_up(n, tile)
    if n_pad != n:
        x2 = jnp.pad(x2, ((0, n_pad - n), (0, 0)))

    # Fused weight (x.dtype) / bias (f32): cols [0:3] coord head, [3:7] angle.
    w_dtype = x.dtype
    w_fused = jnp.zeros((d, _OUT_W), w_dtype)
    w_fused = w_fused.at[:, :_COORD_DIM].set(w_coord.T.astype(w_dtype))
    w_fused = w_fused.at[:, _COORD_DIM:_COORD_DIM + _ANGLE_DIM].set(
        w_angle.T.astype(w_dtype))
    b_fused = jnp.zeros((1, _OUT_W), jnp.float32)
    b_fused = b_fused.at[:, :_COORD_DIM].set(
        b_coord.astype(jnp.float32).reshape(1, -1))
    b_fused = b_fused.at[:, _COORD_DIM:_COORD_DIM + _ANGLE_DIM].set(
        b_angle.astype(jnp.float32).reshape(1, -1))

    grid = (n_pad // tile,)
    cost = pl.CostEstimate(
        flops=2 * n_pad * d * (_COORD_DIM + _ANGLE_DIM),
        transcendentals=n_pad,
        bytes_accessed=(n_pad * d * itemsize
                        + d * _OUT_W * itemsize
                        + n_pad * (_COORD_DIM + _ANGLE_DIM) * itemsize),
    )

    coords, angles = pl.pallas_call(
        _pose_decoder_kernel,
        out_shape=(
            jax.ShapeDtypeStruct((n_pad, _COORD_DIM), x.dtype),
            jax.ShapeDtypeStruct((n_pad, _ANGLE_DIM), x.dtype),
        ),
        grid_spec=pltpu.PrefetchScalarGridSpec(
            num_scalar_prefetch=0,
            grid=grid,
            in_specs=[
                pl.BlockSpec((tile, d), lambda i: (i, 0)),          # x rows
                pl.BlockSpec((d, _OUT_W), lambda i: (0, 0)),        # fused W^T
                pl.BlockSpec((1, _OUT_W), lambda i: (0, 0)),        # fused bias
            ],
            out_specs=(
                pl.BlockSpec((tile, _COORD_DIM), lambda i: (i, 0)),  # coords
                pl.BlockSpec((tile, _ANGLE_DIM), lambda i: (i, 0)),  # angles
            ),
        ),
        compiler_params=pltpu.CompilerParams(
            dimension_semantics=("parallel",),   # lets v7x split rows over 2 TCs
            vmem_limit_bytes=int(vmem_limit),
        ),
        cost_estimate=cost,
    )(x2, w_fused, b_fused)

    coords = coords[:n].reshape(*lead, _COORD_DIM)
    angles = angles[:n].reshape(*lead, _ANGLE_DIM)
    return coords, angles


def _reference(x, w_coord, b_coord, w_angle, b_angle):
    coords = x @ w_coord.T + b_coord
    angles = x @ w_angle.T + b_angle
    norm = jnp.sqrt(jnp.sum(angles * angles, axis=-1, keepdims=True))
    angles = angles / jnp.maximum(norm, 1e-12)
    return coords, angles


if __name__ == "__main__":
    key = jax.random.PRNGKey(0)
    batch, seq, input_dim = 2, 8, 32

    k_x, k_wc, k_bc, k_wa, k_ba = jax.random.split(key, 5)
    x = jax.random.normal(k_x, (batch, seq, input_dim), dtype=jnp.float32)

    # Deterministic parameter init (mimics nn.Linear uniform(-1/sqrt(D), 1/sqrt(D)))
    bound = 1.0 / (input_dim ** 0.5)
    w_coord = jax.random.uniform(k_wc, (3, input_dim), jnp.float32, -bound, bound)
    b_coord = jax.random.uniform(k_bc, (3,), jnp.float32, -bound, bound)
    w_angle = jax.random.uniform(k_wa, (4, input_dim), jnp.float32, -bound, bound)
    b_angle = jax.random.uniform(k_ba, (4,), jnp.float32, -bound, bound)

    coords, angles = vo_pose_quaternion_decoder(
        x, w_coord, b_coord, w_angle, b_angle)
    jax.block_until_ready((coords, angles))

    ref_c, ref_a = _reference(x, w_coord, b_coord, w_angle, b_angle)
    assert coords.shape == (batch, seq, 3)
    assert angles.shape == (batch, seq, 4)
    assert jnp.allclose(coords, ref_c, atol=1e-5, rtol=1e-4)
    assert jnp.allclose(angles, ref_a, atol=1e-5, rtol=1e-4)

    print("KERNEL_OK")
</pallas_src>

<mosaic_0001>
module attributes {stable_mosaic.version = 11 : i64} {
  func.func @_pose_decoder_kernel(%arg0: i32, %arg1: memref<8x32xf32, #tpu.memory_space<vmem>>, %arg2: memref<32x8xf32, #tpu.memory_space<vmem>>, %arg3: memref<1x8xf32, #tpu.memory_space<vmem>>, %arg4: memref<8x3xf32, #tpu.memory_space<vmem>>, %arg5: memref<8x4xf32, #tpu.memory_space<vmem>>) attributes {dimension_semantics = [#tpu.dimension_semantics<parallel>], iteration_bounds = array<i64: 2>, scalar_prefetch = 0 : i64, scratch_operands = 0 : i64, tpu.core_type = #tpu.core_type<tc>, window_params = [{transform_indices = @transform_0, window_bounds = array<i64: 8, 32>}, {pipeline_mode = #tpu.pipeline_mode<synchronous>, transform_indices = @transform_1, window_bounds = array<i64: 32, 8>}, {pipeline_mode = #tpu.pipeline_mode<synchronous>, transform_indices = @transform_2, window_bounds = array<i64: 1, 8>}, {transform_indices = @transform_3, window_bounds = array<i64: 8, 3>}, {transform_indices = @transform_4, window_bounds = array<i64: 8, 4>}]} {
    %c0 = arith.constant 0 : index
    %c0_0 = arith.constant 0 : index
    %0 = vector.load %arg1[%c0, %c0_0] : memref<8x32xf32, #tpu.memory_space<vmem>>, vector<8x32xf32>
    %c0_1 = arith.constant 0 : index
    %c0_2 = arith.constant 0 : index
    %1 = vector.load %arg2[%c0_1, %c0_2] : memref<32x8xf32, #tpu.memory_space<vmem>>, vector<32x8xf32>
    %cst = arith.constant dense<0.000000e+00> : vector<8x8xf32>
    %2 = tpu.matmul %0, %1, %cst {dimension_numbers = #tpu.dot_dimension_numbers<[1], [0], [0], [1], [0, 0, 1, 1], [], []>} : vector<8x32xf32>, vector<32x8xf32>, vector<8x8xf32> -> vector<8x8xf32>
    %c0_3 = arith.constant 0 : index
    %c0_4 = arith.constant 0 : index
    %3 = vector.load %arg3[%c0_3, %c0_4] : memref<1x8xf32, #tpu.memory_space<vmem>>, vector<1x8xf32>
    %4 = vector.broadcast %3 : vector<1x8xf32> to vector<8x8xf32>
    %5 = arith.addf %2, %4 : vector<8x8xf32>
    %6 = vector.extract_strided_slice %5 {offsets = [0, 0], sizes = [8, 3], strides = [1, 1]} : vector<8x8xf32> to vector<8x3xf32>
    %7 = vector.extract_strided_slice %5 {offsets = [0, 3], sizes = [8, 4], strides = [1, 1]} : vector<8x8xf32> to vector<8x4xf32>
    %8 = arith.mulf %7, %7 : vector<8x4xf32>
    %cst_5 = arith.constant dense<0.000000e+00> : vector<8xf32>
    %9 = vector.multi_reduction <add>, %8, %cst_5 [1] : vector<8x4xf32> to vector<8xf32>
    %10 = vector.shape_cast %9 : vector<8xf32> to vector<8x1xf32>
    %cst_6 = arith.constant 1.000000e-24 : f32
    %11 = vector.broadcast %cst_6 : f32 to vector<8x1xf32>
    %12 = arith.maximumf %10, %11 : vector<8x1xf32>
    %13 = math.rsqrt %12 : vector<8x1xf32>
    %c0_7 = arith.constant 0 : index
    %c0_8 = arith.constant 0 : index
    %14 = vector.load %arg4[%c0_7, %c0_8] : memref<8x3xf32, #tpu.memory_space<vmem>>, vector<8x3xf32>
    tpu.vector_store %arg4[%c0_7, %c0_8], %6 {strides = array<i32>} : memref<8x3xf32, #tpu.memory_space<vmem>>, vector<8x3xf32>,
    %15 = vector.broadcast %13 : vector<8x1xf32> to vector<8x4xf32>
    %16 = arith.mulf %7, %15 : vector<8x4xf32>
    %c0_9 = arith.constant 0 : index
    %c0_10 = arith.constant 0 : index
    %17 = vector.load %arg5[%c0_9, %c0_10] : memref<8x4xf32, #tpu.memory_space<vmem>>, vector<8x4xf32>
    tpu.vector_store %arg5[%c0_9, %c0_10], %16 {strides = array<i32>} : memref<8x4xf32, #tpu.memory_space<vmem>>, vector<8x4xf32>,
    return
  }
  func.func @transform_0(%arg0: i32) -> (i32, i32) {
    %c0_i32 = arith.constant 0 : i32
    %c0_i32_0 = arith.constant 0 : i32
    return %arg0, %c0_i32 : i32, i32
  }
  func.func @transform_1(%arg0: i32) -> (i32, i32) {
    %c0_i32 = arith.constant 0 : i32
    %c0_i32_0 = arith.constant 0 : i32
    %c0_i32_1 = arith.constant 0 : i32
    return %c0_i32, %c0_i32_0 : i32, i32
  }
  func.func @transform_2(%arg0: i32) -> (i32, i32) {
    %c0_i32 = arith.constant 0 : i32
    %c0_i32_0 = arith.constant 0 : i32
    %c0_i32_1 = arith.constant 0 : i32
    return %c0_i32, %c0_i32_0 : i32, i32
  }
  func.func @transform_3(%arg0: i32) -> (i32, i32) {
    %c0_i32 = arith.constant 0 : i32
    %c0_i32_0 = arith.constant 0 : i32
    return %arg0, %c0_i32 : i32, i32
  }
  func.func @transform_4(%arg0: i32) -> (i32, i32) {
    %c0_i32 = arith.constant 0 : i32
    %c0_i32_0 = arith.constant 0 : i32
    return %arg0, %c0_i32 : i32, i32
  }
}

</mosaic_0001>

<bundles_post_ra>
// kernel: vo_pose_quaternion_decoder.1
= control target key start
LH: loop header
LB: loop body
LE: loop exit
PB: predicated region body
PF: predicated region fallthrough
CT: control target
= control target key end

     0   :  { %s478_s15 = smov 0   ;;  %s513_s0 = inlined_call_operand.vmem [shape: f32[16,32], index: 0, kind: input, shape index: {}]   ;;  %s514_s1 = inlined_call_operand.vmem [shape: f32[32,8], index: 1, kind: input, shape index: {}]   ;;  %s515_s2 = inlined_call_operand.vmem [shape: f32[1,8], index: 2, kind: input, shape index: {}]   ;;  %s516_s3 = inlined_call_operand.vmem [shape: f32[16,3], index: 3, kind: output, shape index: {0}]   ;;  %s517_s4 = inlined_call_operand.vmem [shape: f32[16,4], index: 4, kind: output, shape index: {1}]  }
   0x1 LB: > { %s393_s16 = sadd.s32 4294967295, %s447_s15   ;;  %p397_p0 = scmp.ge.s32.totalorder %s447_s15, 1  ;;  %s447_s15 = sphi %s478_s15, %s15_s15  }
   0x2   : > { %p164_p1 = scmp.lt.s32.totalorder %s447_s15, 3 }
   0x4   : > { %p165_p2 = pnand %p397_p0, %p164_p1 }
   0x5   : > { %v205_v0 = vld [vmem:[%s514_s1] sm:$0xff] (!%p165_p2)  ;;  %v206_v1 = vld [vmem:[%s514_s1 + $0x8] sm:$0xff] (!%p165_p2)  ;;  %v207_v2 = vld [vmem:[%s514_s1 + $0x10] sm:$0xff] (!%p165_p2)  ;;  %v449_v3 = vmov (!%p165_p2), 0.0|0.0   ;;  %vm450_vm0 = vmmov (!%p165_p2), 0   ;;  %v451_v6 = vmov (!%p165_p2), 0.0  }
   0x6   : > { %168 = sbr.rel (%p165_p2) target bundleno = 622 (0x26e), region = 32  ;;  %421 = vmatprep.subr.bf16.mxu0 (!%p165_p2), %v449_v3  ;;  %v422_v4 = vpack.c.bf16 (!%p165_p2), %v206_v1, %v205_v0  ;;  %v208_v5 = vld [vmem:[%s514_s1 + $0x18] sm:$0xff] (!%p165_p2)  ;;  %418 = vmatprep.mubr.msk.f32.mxu0 (!%p165_p2), %vm450_vm0, %v451_v6  ;;  %p192_p3 = scmp.lt.s32.totalorder (!%p165_p2), %s393_s16, 1  ;;  %vm216_vm1 = vcmask (!%p165_p2), 261120   ;;  %v401_v9 = vld [vmem:[%s515_s2] ss:$0 sm:$0xff] (!%p165_p2) }
   0x7   : > { %v425_v7 = vpack.c.bf16 (!%p165_p2), %v208_v5, %v207_v2  ;;  %vm301_vm2 = vcmask (!%p165_p2), 23552   ;;  %s452_s8 = smov (!%p165_p2), 125   ;;  %vm295_vm3 = vcmask (!%p165_p2), 31744  }
   0x8   : > { %423 = vmatpush3.bf16.msra.mxu0 (!%p165_p2), %v422_v4 }
   0x9   : > { %424 = vmatprep.subr.bf16.mxu0 (!%p165_p2), %v449_v3 }
   0xc   : > { %426 = vmatpush3.bf16.msra.mxu0 (!%p165_p2), %v425_v7 }
   0xd   : > { %s519_s16 = smov (!%p192_p3, %s393_s16), 1 }
   0xe   : > { %s398_s25 = sshll.u32 %s519_s16, 3 }
   0xf   : > { %s195_s28 = scalar_lea.vmem %s513_s0, %s398_s25  ;;  %s199_s7 = scalar_lea.vmem %s516_s3, %s398_s25 }
  0x10   : > { %v204_v8 = vld [vmem:[%s195_s28] sm:$0xff]  ;;  %s203_s11 = scalar_lea.vmem %s517_s4, %s398_s25 }
  0x11   : > { %419 = vmatmul.mubr.msk.f32.vlgmr.msra.gmra.mrb[0].mxu0 %vm216_vm1, %v204_v8 }
  0xe4   : > { %v286_v10 = vpop.f32.mrb[0].mxu0 }
  0xe5   : > { %v287_v11 = vadd.f32 %v401_v9, %v286_v10  ;;  %v420_v12 = vpop.f32.mrb[1].mxu0 }
  0xe7   : > { %302 = vst.msk [vmem:[%s199_s7] sm:$0xff] %vm301_vm2, %v287_v11  ;;  %v290_v13 = vmul.f32 %v287_v11, %v287_v11 }
  0xe9   : > { %292 = vrot.lane.b32.xlu0 %v290_v13, %s452_s8 }
 0x15b   : > { %v293_v14 = vpop.permute.xlu0 %292 }
 0x15c   : > { %v296_v15 = vsel %vm295_vm3, %v293_v14, 0.0 }
 0x15d   : > { %297 = vadd.xlane.f32.xlu0 %v296_v15 }
 0x1ea   : > { %v298_v16 = vpop.xlane.xlu0 %297 }
 0x1eb   : > { %v299_v17 = vmax.f32 %v298_v16, 1e-24 }
 0x1ed   : > { %439 = vrsqrt.f32 %v299_v17 }
 0x1f7   : > { %v440_v18 = vpop.eup %439 }
 0x1f8   : > { %v303_v19 = vmul.f32 %v440_v18, %v287_v11 }
 0x1fa   : > { %305 = vrot.lane.b32.xlu1 %v303_v19, %s452_s8 }
 0x26c   : > { %v306_v20 = vpop.permute.xlu1 %305 }
 0x26d   : > { %308 = vst.msk [vmem:[%s203_s11] sm:$0xff] %vm295_vm3, %v306_v20 }
 0x26e PF: > { %s15_s15 = sadd.s32 1, %s447_s15  }
 0x26f   : > { %p12_p4 = scmp.ge.s32.totalorder %s15_s15, 4  }
 0x271   :  { %14 = sbr.rel (!%p12_p4) target bundleno = 1 (0x1), region = 74 }

</bundles_post_ra>
